<compile_context>
chip_gen: v7x
topology: tpu7x:2x2x1
jax: 0.10.0
libtpu: 0.0.40
codegen_flags: <defaults>
</compile_context>

<pallas_src>
import functools
import math

import jax
import jax.numpy as jnp
from jax import lax
from jax.experimental import pallas as pl
from jax.experimental.pallas import tpu as pltpu

SQRT2 = 1.4142  # constant used by the reference implementation


# ----------------------------------------------------------------------------
# Kernel: normalization + constraint-matrix construction + weighting.
# ----------------------------------------------------------------------------
def _fit_prep_kernel(pts1_ref, pts2_ref, w_ref, x_ref, stats_ref, *,
                     n_valid, normalize_svd):
    """Lane-dense blocks (point axis on lanes):
         pts1_ref, pts2_ref : (TB, 3, Np)   rows [x, y, z]
         w_ref              : (TB, 1, Np)   per-point weights
         x_ref   (out)      : (TB, 9, Np)   X^T = (row_normalize(p) * w)^T
         stats_ref (out)    : (TB, 1, 8)    [c1x, c1y, s1, c2x, c2y, s2, 0, 0]
    """
    p1 = pts1_ref[...]
    p2 = pts2_ref[...]
    w = w_ref[...]
    npad = p1.shape[2]

    # Mask for lane-padded points (n_valid is a trace-time constant).
    valid = (lax.broadcasted_iota(jnp.int32, (1, 1, npad), 2)
             < n_valid).astype(p1.dtype)
    inv_n = 1.0 / float(n_valid)

    p1x, p1y, z1 = p1[:, 0:1, :], p1[:, 1:2, :], p1[:, 2:3, :]
    p2x, p2y, z2 = p2[:, 0:1, :], p2[:, 1:2, :], p2[:, 2:3, :]

    # Uniform-weight centroid (torch: normalize(pts, ones)).
    c1x = jnp.sum(p1x * valid, axis=2, keepdims=True) * inv_n   # (TB, 1, 1)
    c1y = jnp.sum(p1y * valid, axis=2, keepdims=True) * inv_n
    c2x = jnp.sum(p2x * valid, axis=2, keepdims=True) * inv_n
    c2y = jnp.sum(p2y * valid, axis=2, keepdims=True) * inv_n

    d1x, d1y = p1x - c1x, p1y - c1y
    d2x, d2y = p2x - c2x, p2y - c2y
    md1 = jnp.sum(jnp.sqrt(d1x * d1x + d1y * d1y) * valid,
                  axis=2, keepdims=True) * inv_n                # (TB, 1, 1)
    md2 = jnp.sum(jnp.sqrt(d2x * d2x + d2y * d2y) * valid,
                  axis=2, keepdims=True) * inv_n
    # Epsilon only guards padded/degenerate batches; real batches unchanged.
    s1 = SQRT2 / jnp.maximum(md1, 1e-20)
    s2 = SQRT2 / jnp.maximum(md2, 1e-20)

    # pts_n = T @ pts^T with T = [[s,0,-cx*s],[0,s,-cy*s],[0,0,1]]
    x1n = s1 * (p1x - c1x * z1)
    y1n = s1 * (p1y - c1y * z1)
    x2n = s2 * (p2x - c2x * z2)
    y2n = s2 * (p2y - c2y * z2)

    # Per-row scale: weights (+ padding mask), optionally divided by the L2
    # norm of the 9 constraint entries (exact closed form):
    #   sum_k p_k^2 = (x2n^2 + y2n^2 + 1) * (x1n^2 + y1n^2 + z1^2)
    fac = w * valid
    if normalize_svd:
        ssq = (x2n * x2n + y2n * y2n + 1.0) * \
              (x1n * x1n + y1n * y1n + z1 * z1)
        fac = fac * lax.rsqrt(jnp.maximum(ssq, 1e-24))          # EUP rsqrt

    a = x1n * fac
    b = y1n * fac
    c = z1 * fac

    # Constraint rows [x2*x1, x2*y1, x2*z1, y2*x1, y2*y1, y2*z1, x1, y1, z1],
    # each a full-lane-width store.
    x_ref[:, 0:1, :] = x2n * a
    x_ref[:, 1:2, :] = x2n * b
    x_ref[:, 2:3, :] = x2n * c
    x_ref[:, 3:4, :] = y2n * a
    x_ref[:, 4:5, :] = y2n * b
    x_ref[:, 5:6, :] = y2n * c
    x_ref[:, 6:7, :] = a
    x_ref[:, 7:8, :] = b
    x_ref[:, 8:9, :] = c

    # Per-batch scalars; T1/T2 are assembled in the wrapper (plain JAX).
    zero = jnp.zeros_like(s1)
    stats_ref[:, :, 0:1] = c1x
    stats_ref[:, :, 1:2] = c1y
    stats_ref[:, :, 2:3] = s1
    stats_ref[:, :, 3:4] = c2x
    stats_ref[:, :, 4:5] = c2y
    stats_ref[:, :, 5:6] = s2
    stats_ref[:, :, 6:7] = zero
    stats_ref[:, :, 7:8] = zero


# ----------------------------------------------------------------------------
# Wrapper
# ----------------------------------------------------------------------------
def _round_up(x, m):
    return (x + m - 1) // m * m


def _tensorcores_per_chip():
    try:
        kind = jax.devices()[0].device_kind.lower()
    except Exception:
        return 2
    single_tc = ("v5e", "v5 lite", "v5lite", "v6e", "v6 lite", "v6lite")
    if any(s in kind for s in single_tc):
        return 1
    return 2  # v4 / v5p / v7x: two TensorCores per chip


def _pick_batch_tile(B, Npad):
    """Batches per grid step.  Big tiles amortize the ~0.35us/step overhead;
    the tile footprint (double-buffered inputs + X output, 16 f32 rows of
    Npad lanes per batch) stays well inside the scoped VMEM budget on all
    generations; >= 2 grid steps are kept only on dual-TensorCore chips."""
    per_batch_bytes = 2 * 16 * Npad * 4       # 2x double-buffering
    budget = 12 * 1024 * 1024
    cap = max(1, budget // per_batch_bytes)
    min_steps = 2 if (_tensorcores_per_chip() >= 2 and B >= 2) else 1
    return max(1, min(B, cap, pl.cdiv(B, min_steps)))


def fit_fundamental(pts1, pts2, weights, *, normalize_SVD=True):
    """Port of deepFEPE Fit.forward.

    pts1, pts2 : (B, N, 3) homogeneous correspondences (float32)
    weights    : (B, 1, N) per-match weights
    Returns (out, residual): out (B,3,3) fundamental matrix, residual (B,N).
    """
    B, N, _ = pts1.shape
    dt = pts1.dtype

    # Lane-dense layout: point axis last, padded to a multiple of 128.
    Npad = _round_up(N, 128)
    TB = _pick_batch_tile(B, Npad)
    Bpad = _round_up(B, TB)

    p1t = jnp.transpose(pts1, (0, 2, 1))            # (B, 3, N)
    p2t = jnp.transpose(pts2, (0, 2, 1))
    w = weights.reshape(B, 1, N).astype(dt)         # native (B, 1, N) layout

    pad = ((0, Bpad - B), (0, 0), (0, Npad - N))
    p1t, p2t, w = jnp.pad(p1t, pad), jnp.pad(p2t, pad), jnp.pad(w, pad)

    grid = (Bpad // TB,)
    prep = functools.partial(_fit_prep_kernel, n_valid=N,
                             normalize_svd=normalize_SVD)
    Xt, stats = pl.pallas_call(
        prep,
        out_shape=(jax.ShapeDtypeStruct((Bpad, 9, Npad), dt),
                   jax.ShapeDtypeStruct((Bpad, 1, 8), dt)),
        grid=grid,
        in_specs=[
            pl.BlockSpec((TB, 3, Npad), lambda i: (i, 0, 0)),
            pl.BlockSpec((TB, 3, Npad), lambda i: (i, 0, 0)),
            pl.BlockSpec((TB, 1, Npad), lambda i: (i, 0, 0)),
        ],
        out_specs=[
            pl.BlockSpec((TB, 9, Npad), lambda i: (i, 0, 0)),
            pl.BlockSpec((TB, 1, 8), lambda i: (i, 0, 0)),
        ],
        compiler_params=pltpu.CompilerParams(
            dimension_semantics=("parallel",),
            vmem_limit_bytes=32 * 1024 * 1024),
    )(p1t, p2t, w)

    Xt = Xt[:B]                                     # (B, 9, Npad) = X^T
    stats = stats[:B]

    # T1 / T2 from the per-batch scalars (cheap; kept out of the kernel).
    c1x, c1y, s1 = stats[:, 0, 0], stats[:, 0, 1], stats[:, 0, 2]
    c2x, c2y, s2 = stats[:, 0, 3], stats[:, 0, 4], stats[:, 0, 5]

    def build_T(cx, cy, s):
        z = jnp.zeros_like(s)
        o = jnp.ones_like(s)
        return jnp.stack([jnp.stack([s, z, -cx * s], axis=-1),
                          jnp.stack([z, s, -cy * s], axis=-1),
                          jnp.stack([z, z, o], axis=-1)], axis=-2)

    T1 = build_T(c1x, c1y, s1)
    T2 = build_T(c2x, c2y, s2)

    # TODO(synk): batched SVDs (torch.svd) have no Pallas equivalent; use XLA.
    # Last right-singular vector of X == last left-singular vector of X^T.
    U, _, _ = jnp.linalg.svd(Xt, full_matrices=False)   # U: (B, 9, 9)
    f = U[:, :, -1]                                     # (B, 9)
    F_vecs = f / jnp.linalg.norm(f, axis=1, keepdims=True)

    Fmat = f.reshape(B, 3, 3)
    Uf, Sf, Vfh = jnp.linalg.svd(Fmat)
    Sm = Sf * jnp.array([1.0, 1.0, 0.0], dt)            # rank-2 mask
    F_rank2 = jnp.einsum('bij,bj,bjk->bik', Uf, Sm, Vfh)
    out = jnp.einsum('bji,bjk,bkl->bil', T2, F_rank2, T1)   # T2^T @ F_ @ T1

    # residual = X @ (f/|f|): 9 lane-dense FMAs in XLA (no second kernel).
    residual = jnp.einsum('bkn,bk->bn', Xt, F_vecs)[:, :N]

    return out, residual


# ----------------------------------------------------------------------------
# Pure-JAX reference (mirrors the PyTorch code path), for verification.
# ----------------------------------------------------------------------------
def _reference_fit(pts1, pts2, weights, normalize_SVD=True):
    dt = pts1.dtype
    B, N, _ = pts1.shape
    w = weights.reshape(B, N, 1).astype(dt)
    ones = jnp.ones_like(w)

    def normalize(pts, wts):
        denom = jnp.sum(wts, axis=1)                           # (B, 1)
        c = jnp.sum(pts * wts, axis=1) / denom                 # (B, 3)
        newpts = pts - c[:, None, :]
        meandist = jnp.sum(
            wts[:, :, 0] * jnp.sqrt(jnp.sum(newpts[:, :, :2] ** 2, axis=2)),
            axis=1) / denom[:, 0]
        scale = SQRT2 / meandist
        z = jnp.zeros_like(scale)
        o = jnp.ones_like(scale)
        T = jnp.stack([jnp.stack([scale, z, -c[:, 0] * scale], -1),
                       jnp.stack([z, scale, -c[:, 1] * scale], -1),
                       jnp.stack([z, z, o], -1)], axis=1)      # (B, 3, 3)
        return jnp.einsum('bij,bnj->bin', T, pts), T           # (B, 3, N)

    p1n, T1 = normalize(pts1, ones)
    p2n, T2 = normalize(pts2, ones)
    p = jnp.concatenate([p2n[:, 0:1] * p1n, p2n[:, 1:2] * p1n, p1n], axis=1)
    p = jnp.transpose(p, (0, 2, 1))                            # (B, N, 9)
    if normalize_SVD:
        p = p / jnp.maximum(jnp.linalg.norm(p, axis=2, keepdims=True), 1e-12)
    X = p * w
    _, _, Vh = jnp.linalg.svd(X, full_matrices=False)
    f = Vh[:, -1, :]
    F_vecs = f / jnp.linalg.norm(f, axis=1, keepdims=True)
    Fmat = f.reshape(B, 3, 3)
    Uf, Sf, Vfh = jnp.linalg.svd(Fmat)
    Sm = Sf * jnp.array([1.0, 1.0, 0.0], dt)
    F_ = jnp.einsum('bij,bj,bjk->bik', Uf, Sm, Vfh)
    out = jnp.einsum('bji,bjk,bkl->bil', T2, F_, T1)
    residual = jnp.einsum('bnk,bk->bn', X, F_vecs)
    return out, residual


def _close_up_to_sign(a, b, atol, rtol):
    # SVD-derived outputs are defined up to a per-batch sign.
    axes = tuple(range(1, a.ndim))
    s = jnp.sign(jnp.sum(a * b, axis=axes, keepdims=True))
    s = jnp.where(s == 0, jnp.ones_like(s), s)
    return bool(jnp.allclose(a, s * b, atol=atol, rtol=rtol))


def _unit_fro(F):
    nrm = jnp.linalg.norm(F.reshape(F.shape[0], -1), axis=1)
    return F / nrm.reshape(-1, 1, 1)


if __name__ == "__main__":
    key = jax.random.PRNGKey(0)
    B, N = 3, 120     # N not a multiple of 128 -> exercises lane padding
    kP, kz, kw, kn = jax.random.split(key, 4)

    # Synthetic two-view geometry (well-conditioned epipolar null space).
    P = jnp.concatenate(
        [jax.random.uniform(kP, (B, N, 2), jnp.float32, -2.0, 2.0),
         jax.random.uniform(kz, (B, N, 1), jnp.float32, 4.0, 8.0)], axis=-1)
    fpx, cx, cy = 320.0, 160.0, 120.0
    K = jnp.array([[fpx, 0.0, cx], [0.0, fpx, cy], [0.0, 0.0, 1.0]],
                  jnp.float32)
    ay, ax = 0.08, -0.05
    Ry = jnp.array([[math.cos(ay), 0.0, math.sin(ay)],
                    [0.0, 1.0, 0.0],
                    [-math.sin(ay), 0.0, math.cos(ay)]], jnp.float32)
    Rx = jnp.array([[1.0, 0.0, 0.0],
                    [0.0, math.cos(ax), -math.sin(ax)],
                    [0.0, math.sin(ax), math.cos(ax)]], jnp.float32)
    R = Ry @ Rx
    t = jnp.array([0.3, 0.05, 0.02], jnp.float32)

    def project(Q):
        uv = jnp.einsum('ij,bnj->bni', K, Q)
        return uv[..., :2] / uv[..., 2:3]

    x1 = project(P)
    x2 = project(jnp.einsum('ij,bnj->bni', R, P) + t)
    x2 = x2 + 0.2 * jax.random.normal(kn, x2.shape, jnp.float32)
    ones = jnp.ones((B, N, 1), jnp.float32)
    pts1 = jnp.concatenate([x1, ones], axis=-1)
    pts2 = jnp.concatenate([x2, ones], axis=-1)
    weights = jax.random.uniform(kw, (B, 1, N), jnp.float32, 0.5, 1.5)

    Fout, residual = fit_fundamental(pts1, pts2, weights)
    Fout, residual = jax.block_until_ready((Fout, residual))

    Fref, res_ref = _reference_fit(pts1, pts2, weights)
    ok_F = _close_up_to_sign(_unit_fro(Fout), _unit_fro(Fref),
                             atol=5e-4, rtol=5e-3)
    ok_r = _close_up_to_sign(residual, res_ref, atol=5e-4, rtol=5e-3)
    assert ok_F and ok_r, "Pallas Fit output mismatch vs reference"
    print("KERNEL_OK")
</pallas_src>

<mosaic_0001>
module attributes {stable_mosaic.version = 11 : i64} {
  func.func @_fit_prep_kernel(%arg0: i32, %arg1: memref<2x3x128xf32, #tpu.memory_space<vmem>>, %arg2: memref<2x3x128xf32, #tpu.memory_space<vmem>>, %arg3: memref<2x1x128xf32, #tpu.memory_space<vmem>>, %arg4: memref<2x9x128xf32, #tpu.memory_space<vmem>>, %arg5: memref<2x1x8xf32, #tpu.memory_space<vmem>>) attributes {dimension_semantics = [#tpu.dimension_semantics<parallel>], iteration_bounds = array<i64: 2>, scalar_prefetch = 0 : i64, scratch_operands = 0 : i64, tpu.core_type = #tpu.core_type<tc>, window_params = [{transform_indices = @transform_0, window_bounds = array<i64: 2, 3, 128>}, {transform_indices = @transform_1, window_bounds = array<i64: 2, 3, 128>}, {transform_indices = @transform_2, window_bounds = array<i64: 2, 1, 128>}, {transform_indices = @transform_3, window_bounds = array<i64: 2, 9, 128>}, {transform_indices = @transform_4, window_bounds = array<i64: 2, 1, 8>}]} {
    %c0 = arith.constant 0 : index
    %c0_0 = arith.constant 0 : index
    %c0_1 = arith.constant 0 : index
    %0 = vector.load %arg1[%c0, %c0_0, %c0_1] : memref<2x3x128xf32, #tpu.memory_space<vmem>>, vector<2x3x128xf32>
    %c0_2 = arith.constant 0 : index
    %c0_3 = arith.constant 0 : index
    %c0_4 = arith.constant 0 : index
    %1 = vector.load %arg2[%c0_2, %c0_3, %c0_4] : memref<2x3x128xf32, #tpu.memory_space<vmem>>, vector<2x3x128xf32>
    %c0_5 = arith.constant 0 : index
    %c0_6 = arith.constant 0 : index
    %c0_7 = arith.constant 0 : index
    %2 = vector.load %arg3[%c0_5, %c0_6, %c0_7] : memref<2x1x128xf32, #tpu.memory_space<vmem>>, vector<2x1x128xf32>
    %3 = tpu.iota {dimensions = array<i32: 2>} : vector<1x1x128xi32>
    %c120_i32 = arith.constant 120 : i32
    %4 = vector.broadcast %c120_i32 : i32 to vector<1x1x128xi32>
    %5 = arith.cmpi slt, %3, %4 : vector<1x1x128xi32>
    %6 = arith.extui %5 : vector<1x1x128xi1> to vector<1x1x128xi32>
    %7 = arith.sitofp %6 : vector<1x1x128xi32> to vector<1x1x128xf32>
    %8 = vector.extract_strided_slice %0 {offsets = [0, 0, 0], sizes = [2, 1, 128], strides = [1, 1, 1]} : vector<2x3x128xf32> to vector<2x1x128xf32>
    %9 = vector.extract_strided_slice %0 {offsets = [0, 1, 0], sizes = [2, 1, 128], strides = [1, 1, 1]} : vector<2x3x128xf32> to vector<2x1x128xf32>
    %10 = vector.extract_strided_slice %0 {offsets = [0, 2, 0], sizes = [2, 1, 128], strides = [1, 1, 1]} : vector<2x3x128xf32> to vector<2x1x128xf32>
    %11 = vector.extract_strided_slice %1 {offsets = [0, 0, 0], sizes = [2, 1, 128], strides = [1, 1, 1]} : vector<2x3x128xf32> to vector<2x1x128xf32>
    %12 = vector.extract_strided_slice %1 {offsets = [0, 1, 0], sizes = [2, 1, 128], strides = [1, 1, 1]} : vector<2x3x128xf32> to vector<2x1x128xf32>
    %13 = vector.extract_strided_slice %1 {offsets = [0, 2, 0], sizes = [2, 1, 128], strides = [1, 1, 1]} : vector<2x3x128xf32> to vector<2x1x128xf32>
    %14 = vector.broadcast %7 : vector<1x1x128xf32> to vector<2x1x128xf32>
    %15 = arith.mulf %8, %14 : vector<2x1x128xf32>
    %cst = arith.constant dense<0.000000e+00> : vector<2x1xf32>
    %16 = vector.multi_reduction <add>, %15, %cst [2] : vector<2x1x128xf32> to vector<2x1xf32>
    %17 = vector.shape_cast %16 : vector<2x1xf32> to vector<2x1x1xf32>
    %cst_8 = arith.constant 0.00833333377 : f32
    %18 = vector.broadcast %cst_8 : f32 to vector<2x1x1xf32>
    %19 = arith.mulf %17, %18 : vector<2x1x1xf32>
    %20 = vector.broadcast %7 : vector<1x1x128xf32> to vector<2x1x128xf32>
    %21 = arith.mulf %9, %20 : vector<2x1x128xf32>
    %cst_9 = arith.constant dense<0.000000e+00> : vector<2x1xf32>
    %22 = vector.multi_reduction <add>, %21, %cst_9 [2] : vector<2x1x128xf32> to vector<2x1xf32>
    %23 = vector.shape_cast %22 : vector<2x1xf32> to vector<2x1x1xf32>
    %cst_10 = arith.constant 0.00833333377 : f32
    %24 = vector.broadcast %cst_10 : f32 to vector<2x1x1xf32>
    %25 = arith.mulf %23, %24 : vector<2x1x1xf32>
    %26 = vector.broadcast %7 : vector<1x1x128xf32> to vector<2x1x128xf32>
    %27 = arith.mulf %11, %26 : vector<2x1x128xf32>
    %cst_11 = arith.constant dense<0.000000e+00> : vector<2x1xf32>
    %28 = vector.multi_reduction <add>, %27, %cst_11 [2] : vector<2x1x128xf32> to vector<2x1xf32>
    %29 = vector.shape_cast %28 : vector<2x1xf32> to vector<2x1x1xf32>
    %cst_12 = arith.constant 0.00833333377 : f32
    %30 = vector.broadcast %cst_12 : f32 to vector<2x1x1xf32>
    %31 = arith.mulf %29, %30 : vector<2x1x1xf32>
    %32 = vector.broadcast %7 : vector<1x1x128xf32> to vector<2x1x128xf32>
    %33 = arith.mulf %12, %32 : vector<2x1x128xf32>
    %cst_13 = arith.constant dense<0.000000e+00> : vector<2x1xf32>
    %34 = vector.multi_reduction <add>, %33, %cst_13 [2] : vector<2x1x128xf32> to vector<2x1xf32>
    %35 = vector.shape_cast %34 : vector<2x1xf32> to vector<2x1x1xf32>
    %cst_14 = arith.constant 0.00833333377 : f32
    %36 = vector.broadcast %cst_14 : f32 to vector<2x1x1xf32>
    %37 = arith.mulf %35, %36 : vector<2x1x1xf32>
    %38 = vector.broadcast %19 : vector<2x1x1xf32> to vector<2x1x128xf32>
    %39 = arith.subf %8, %38 : vector<2x1x128xf32>
    %40 = vector.broadcast %25 : vector<2x1x1xf32> to vector<2x1x128xf32>
    %41 = arith.subf %9, %40 : vector<2x1x128xf32>
    %42 = vector.broadcast %31 : vector<2x1x1xf32> to vector<2x1x128xf32>
    %43 = arith.subf %11, %42 : vector<2x1x128xf32>
    %44 = vector.broadcast %37 : vector<2x1x1xf32> to vector<2x1x128xf32>
    %45 = arith.subf %12, %44 : vector<2x1x128xf32>
    %46 = arith.mulf %39, %39 : vector<2x1x128xf32>
    %47 = arith.mulf %41, %41 : vector<2x1x128xf32>
    %48 = arith.addf %46, %47 : vector<2x1x128xf32>
    %49 = math.sqrt %48 : vector<2x1x128xf32>
    %50 = vector.broadcast %7 : vector<1x1x128xf32> to vector<2x1x128xf32>
    %51 = arith.mulf %49, %50 : vector<2x1x128xf32>
    %cst_15 = arith.constant dense<0.000000e+00> : vector<2x1xf32>
    %52 = vector.multi_reduction <add>, %51, %cst_15 [2] : vector<2x1x128xf32> to vector<2x1xf32>
    %53 = vector.shape_cast %52 : vector<2x1xf32> to vector<2x1x1xf32>
    %cst_16 = arith.constant 0.00833333377 : f32
    %54 = vector.broadcast %cst_16 : f32 to vector<2x1x1xf32>
    %55 = arith.mulf %53, %54 : vector<2x1x1xf32>
    %56 = arith.mulf %43, %43 : vector<2x1x128xf32>
    %57 = arith.mulf %45, %45 : vector<2x1x128xf32>
    %58 = arith.addf %56, %57 : vector<2x1x128xf32>
    %59 = math.sqrt %58 : vector<2x1x128xf32>
    %60 = vector.broadcast %7 : vector<1x1x128xf32> to vector<2x1x128xf32>
    %61 = arith.mulf %59, %60 : vector<2x1x128xf32>
    %cst_17 = arith.constant dense<0.000000e+00> : vector<2x1xf32>
    %62 = vector.multi_reduction <add>, %61, %cst_17 [2] : vector<2x1x128xf32> to vector<2x1xf32>
    %63 = vector.shape_cast %62 : vector<2x1xf32> to vector<2x1x1xf32>
    %cst_18 = arith.constant 0.00833333377 : f32
    %64 = vector.broadcast %cst_18 : f32 to vector<2x1x1xf32>
    %65 = arith.mulf %63, %64 : vector<2x1x1xf32>
    %cst_19 = arith.constant 9.99999968E-21 : f32
    %66 = vector.broadcast %cst_19 : f32 to vector<2x1x1xf32>
    %67 = arith.maximumf %55, %66 : vector<2x1x1xf32>
    %cst_20 = arith.constant 1.414200e+00 : f32
    %68 = vector.broadcast %cst_20 : f32 to vector<2x1x1xf32>
    %69 = arith.divf %68, %67 : vector<2x1x1xf32>
    %cst_21 = arith.constant 9.99999968E-21 : f32
    %70 = vector.broadcast %cst_21 : f32 to vector<2x1x1xf32>
    %71 = arith.maximumf %65, %70 : vector<2x1x1xf32>
    %cst_22 = arith.constant 1.414200e+00 : f32
    %72 = vector.broadcast %cst_22 : f32 to vector<2x1x1xf32>
    %73 = arith.divf %72, %71 : vector<2x1x1xf32>
    %74 = vector.broadcast %19 : vector<2x1x1xf32> to vector<2x1x128xf32>
    %75 = arith.mulf %74, %10 : vector<2x1x128xf32>
    %76 = arith.subf %8, %75 : vector<2x1x128xf32>
    %77 = vector.broadcast %69 : vector<2x1x1xf32> to vector<2x1x128xf32>
    %78 = arith.mulf %77, %76 : vector<2x1x128xf32>
    %79 = vector.broadcast %25 : vector<2x1x1xf32> to vector<2x1x128xf32>
    %80 = arith.mulf %79, %10 : vector<2x1x128xf32>
    %81 = arith.subf %9, %80 : vector<2x1x128xf32>
    %82 = vector.broadcast %69 : vector<2x1x1xf32> to vector<2x1x128xf32>
    %83 = arith.mulf %82, %81 : vector<2x1x128xf32>
    %84 = vector.broadcast %31 : vector<2x1x1xf32> to vector<2x1x128xf32>
    %85 = arith.mulf %84, %13 : vector<2x1x128xf32>
    %86 = arith.subf %11, %85 : vector<2x1x128xf32>
    %87 = vector.broadcast %73 : vector<2x1x1xf32> to vector<2x1x128xf32>
    %88 = arith.mulf %87, %86 : vector<2x1x128xf32>
    %89 = vector.broadcast %37 : vector<2x1x1xf32> to vector<2x1x128xf32>
    %90 = arith.mulf %89, %13 : vector<2x1x128xf32>
    %91 = arith.subf %12, %90 : vector<2x1x128xf32>
    %92 = vector.broadcast %73 : vector<2x1x1xf32> to vector<2x1x128xf32>
    %93 = arith.mulf %92, %91 : vector<2x1x128xf32>
    %94 = vector.broadcast %7 : vector<1x1x128xf32> to vector<2x1x128xf32>
    %95 = arith.mulf %2, %94 : vector<2x1x128xf32>
    %96 = arith.mulf %88, %88 : vector<2x1x128xf32>
    %97 = arith.mulf %93, %93 : vector<2x1x128xf32>
    %98 = arith.addf %96, %97 : vector<2x1x128xf32>
    %cst_23 = arith.constant 1.000000e+00 : f32
    %99 = vector.broadcast %cst_23 : f32 to vector<2x1x128xf32>
    %100 = arith.addf %98, %99 : vector<2x1x128xf32>
    %101 = arith.mulf %78, %78 : vector<2x1x128xf32>
    %102 = arith.mulf %83, %83 : vector<2x1x128xf32>
    %103 = arith.addf %101, %102 : vector<2x1x128xf32>
    %104 = arith.mulf %10, %10 : vector<2x1x128xf32>
    %105 = arith.addf %103, %104 : vector<2x1x128xf32>
    %106 = arith.mulf %100, %105 : vector<2x1x128xf32>
    %cst_24 = arith.constant 1.000000e-24 : f32
    %107 = vector.broadcast %cst_24 : f32 to vector<2x1x128xf32>
    %108 = arith.maximumf %106, %107 : vector<2x1x128xf32>
    %109 = math.rsqrt %108 : vector<2x1x128xf32>
    %110 = arith.mulf %95, %109 : vector<2x1x128xf32>
    %111 = arith.mulf %78, %110 : vector<2x1x128xf32>
    %112 = arith.mulf %83, %110 : vector<2x1x128xf32>
    %113 = arith.mulf %10, %110 : vector<2x1x128xf32>
    %114 = arith.mulf %88, %111 : vector<2x1x128xf32>
    %c0_25 = arith.constant 0 : index
    %c0_26 = arith.constant 0 : index
    %c0_27 = arith.constant 0 : index
    %115 = vector.load %arg4[%c0_25, %c0_26, %c0_27] : memref<2x9x128xf32, #tpu.memory_space<vmem>>, vector<2x1x128xf32>
    tpu.vector_store %arg4[%c0_25, %c0_26, %c0_27], %114 {strides = array<i32>} : memref<2x9x128xf32, #tpu.memory_space<vmem>>, vector<2x1x128xf32>,
    %116 = arith.mulf %88, %112 : vector<2x1x128xf32>
    %c0_28 = arith.constant 0 : index
    %c1 = arith.constant 1 : index
    %c0_29 = arith.constant 0 : index
    %117 = vector.load %arg4[%c0_28, %c1, %c0_29] : memref<2x9x128xf32, #tpu.memory_space<vmem>>, vector<2x1x128xf32>
    tpu.vector_store %arg4[%c0_28, %c1, %c0_29], %116 {strides = array<i32>} : memref<2x9x128xf32, #tpu.memory_space<vmem>>, vector<2x1x128xf32>,
    %118 = arith.mulf %88, %113 : vector<2x1x128xf32>
    %c0_30 = arith.constant 0 : index
    %c2 = arith.constant 2 : index
    %c0_31 = arith.constant 0 : index
    %119 = vector.load %arg4[%c0_30, %c2, %c0_31] : memref<2x9x128xf32, #tpu.memory_space<vmem>>, vector<2x1x128xf32>
    tpu.vector_store %arg4[%c0_30, %c2, %c0_31], %118 {strides = array<i32>} : memref<2x9x128xf32, #tpu.memory_space<vmem>>, vector<2x1x128xf32>,
    %120 = arith.mulf %93, %111 : vector<2x1x128xf32>
    %c0_32 = arith.constant 0 : index
    %c3 = arith.constant 3 : index
    %c0_33 = arith.constant 0 : index
    %121 = vector.load %arg4[%c0_32, %c3, %c0_33] : memref<2x9x128xf32, #tpu.memory_space<vmem>>, vector<2x1x128xf32>
    tpu.vector_store %arg4[%c0_32, %c3, %c0_33], %120 {strides = array<i32>} : memref<2x9x128xf32, #tpu.memory_space<vmem>>, vector<2x1x128xf32>,
    %122 = arith.mulf %93, %112 : vector<2x1x128xf32>
    %c0_34 = arith.constant 0 : index
    %c4 = arith.constant 4 : index
    %c0_35 = arith.constant 0 : index
    %123 = vector.load %arg4[%c0_34, %c4, %c0_35] : memref<2x9x128xf32, #tpu.memory_space<vmem>>, vector<2x1x128xf32>
    tpu.vector_store %arg4[%c0_34, %c4, %c0_35], %122 {strides = array<i32>} : memref<2x9x128xf32, #tpu.memory_space<vmem>>, vector<2x1x128xf32>,
    %124 = arith.mulf %93, %113 : vector<2x1x128xf32>
    %c0_36 = arith.constant 0 : index
    %c5 = arith.constant 5 : index
    %c0_37 = arith.constant 0 : index
    %125 = vector.load %arg4[%c0_36, %c5, %c0_37] : memref<2x9x128xf32, #tpu.memory_space<vmem>>, vector<2x1x128xf32>
    tpu.vector_store %arg4[%c0_36, %c5, %c0_37], %124 {strides = array<i32>} : memref<2x9x128xf32, #tpu.memory_space<vmem>>, vector<2x1x128xf32>,
    %c0_38 = arith.constant 0 : index
    %c6 = arith.constant 6 : index
    %c0_39 = arith.constant 0 : index
    %126 = vector.load %arg4[%c0_38, %c6, %c0_39] : memref<2x9x128xf32, #tpu.memory_space<vmem>>, vector<2x1x128xf32>
    tpu.vector_store %arg4[%c0_38, %c6, %c0_39], %111 {strides = array<i32>} : memref<2x9x128xf32, #tpu.memory_space<vmem>>, vector<2x1x128xf32>,
    %c0_40 = arith.constant 0 : index
    %c7 = arith.constant 7 : index
    %c0_41 = arith.constant 0 : index
    %127 = vector.load %arg4[%c0_40, %c7, %c0_41] : memref<2x9x128xf32, #tpu.memory_space<vmem>>, vector<2x1x128xf32>
    tpu.vector_store %arg4[%c0_40, %c7, %c0_41], %112 {strides = array<i32>} : memref<2x9x128xf32, #tpu.memory_space<vmem>>, vector<2x1x128xf32>,
    %c0_42 = arith.constant 0 : index
    %c8 = arith.constant 8 : index
    %c0_43 = arith.constant 0 : index
    %128 = vector.load %arg4[%c0_42, %c8, %c0_43] : memref<2x9x128xf32, #tpu.memory_space<vmem>>, vector<2x1x128xf32>
    tpu.vector_store %arg4[%c0_42, %c8, %c0_43], %113 {strides = array<i32>} : memref<2x9x128xf32, #tpu.memory_space<vmem>>, vector<2x1x128xf32>,
    %cst_44 = arith.constant 0.000000e+00 : f32
    %129 = vector.broadcast %cst_44 : f32 to vector<2x1x1xf32>
    %c0_45 = arith.constant 0 : index
    %c0_46 = arith.constant 0 : index
    %c0_47 = arith.constant 0 : index
    %130 = vector.load %arg5[%c0_45, %c0_46, %c0_47] : memref<2x1x8xf32, #tpu.memory_space<vmem>>, vector<2x1x1xf32>
    tpu.vector_store %arg5[%c0_45, %c0_46, %c0_47], %19 {strides = array<i32>} : memref<2x1x8xf32, #tpu.memory_space<vmem>>, vector<2x1x1xf32>,
    %c0_48 = arith.constant 0 : index
    %c0_49 = arith.constant 0 : index
    %c1_50 = arith.constant 1 : index
    %131 = vector.load %arg5[%c0_48, %c0_49, %c1_50] : memref<2x1x8xf32, #tpu.memory_space<vmem>>, vector<2x1x1xf32>
    tpu.vector_store %arg5[%c0_48, %c0_49, %c1_50], %25 {strides = array<i32>} : memref<2x1x8xf32, #tpu.memory_space<vmem>>, vector<2x1x1xf32>,
    %c0_51 = arith.constant 0 : index
    %c0_52 = arith.constant 0 : index
    %c2_53 = arith.constant 2 : index
    %132 = vector.load %arg5[%c0_51, %c0_52, %c2_53] : memref<2x1x8xf32, #tpu.memory_space<vmem>>, vector<2x1x1xf32>
    tpu.vector_store %arg5[%c0_51, %c0_52, %c2_53], %69 {strides = array<i32>} : memref<2x1x8xf32, #tpu.memory_space<vmem>>, vector<2x1x1xf32>,
    %c0_54 = arith.constant 0 : index
    %c0_55 = arith.constant 0 : index
    %c3_56 = arith.constant 3 : index
    %133 = vector.load %arg5[%c0_54, %c0_55, %c3_56] : memref<2x1x8xf32, #tpu.memory_space<vmem>>, vector<2x1x1xf32>
    tpu.vector_store %arg5[%c0_54, %c0_55, %c3_56], %31 {strides = array<i32>} : memref<2x1x8xf32, #tpu.memory_space<vmem>>, vector<2x1x1xf32>,
    %c0_57 = arith.constant 0 : index
    %c0_58 = arith.constant 0 : index
    %c4_59 = arith.constant 4 : index
    %134 = vector.load %arg5[%c0_57, %c0_58, %c4_59] : memref<2x1x8xf32, #tpu.memory_space<vmem>>, vector<2x1x1xf32>
    tpu.vector_store %arg5[%c0_57, %c0_58, %c4_59], %37 {strides = array<i32>} : memref<2x1x8xf32, #tpu.memory_space<vmem>>, vector<2x1x1xf32>,
    %c0_60 = arith.constant 0 : index
    %c0_61 = arith.constant 0 : index
    %c5_62 = arith.constant 5 : index
    %135 = vector.load %arg5[%c0_60, %c0_61, %c5_62] : memref<2x1x8xf32, #tpu.memory_space<vmem>>, vector<2x1x1xf32>
    tpu.vector_store %arg5[%c0_60, %c0_61, %c5_62], %73 {strides = array<i32>} : memref<2x1x8xf32, #tpu.memory_space<vmem>>, vector<2x1x1xf32>,
    %c0_63 = arith.constant 0 : index
    %c0_64 = arith.constant 0 : index
    %c6_65 = arith.constant 6 : index
    %136 = vector.load %arg5[%c0_63, %c0_64, %c6_65] : memref<2x1x8xf32, #tpu.memory_space<vmem>>, vector<2x1x1xf32>
    tpu.vector_store %arg5[%c0_63, %c0_64, %c6_65], %129 {strides = array<i32>} : memref<2x1x8xf32, #tpu.memory_space<vmem>>, vector<2x1x1xf32>,
    %c0_66 = arith.constant 0 : index
    %c0_67 = arith.constant 0 : index
    %c7_68 = arith.constant 7 : index
    %137 = vector.load %arg5[%c0_66, %c0_67, %c7_68] : memref<2x1x8xf32, #tpu.memory_space<vmem>>, vector<2x1x1xf32>
    tpu.vector_store %arg5[%c0_66, %c0_67, %c7_68], %129 {strides = array<i32>} : memref<2x1x8xf32, #tpu.memory_space<vmem>>, vector<2x1x1xf32>,
    return
  }
  func.func @transform_0(%arg0: i32) -> (i32, i32, i32) {
    %c0_i32 = arith.constant 0 : i32
    %c0_i32_0 = arith.constant 0 : i32
    %c0_i32_1 = arith.constant 0 : i32
    return %arg0, %c0_i32, %c0_i32_0 : i32, i32, i32
  }
  func.func @transform_1(%arg0: i32) -> (i32, i32, i32) {
    %c0_i32 = arith.constant 0 : i32
    %c0_i32_0 = arith.constant 0 : i32
    %c0_i32_1 = arith.constant 0 : i32
    return %arg0, %c0_i32, %c0_i32_0 : i32, i32, i32
  }
  func.func @transform_2(%arg0: i32) -> (i32, i32, i32) {
    %c0_i32 = arith.constant 0 : i32
    %c0_i32_0 = arith.constant 0 : i32
    %c0_i32_1 = arith.constant 0 : i32
    return %arg0, %c0_i32, %c0_i32_0 : i32, i32, i32
  }
  func.func @transform_3(%arg0: i32) -> (i32, i32, i32) {
    %c0_i32 = arith.constant 0 : i32
    %c0_i32_0 = arith.constant 0 : i32
    %c0_i32_1 = arith.constant 0 : i32
    return %arg0, %c0_i32, %c0_i32_0 : i32, i32, i32
  }
  func.func @transform_4(%arg0: i32) -> (i32, i32, i32) {
    %c0_i32 = arith.constant 0 : i32
    %c0_i32_0 = arith.constant 0 : i32
    %c0_i32_1 = arith.constant 0 : i32
    return %arg0, %c0_i32, %c0_i32_0 : i32, i32, i32
  }
}

</mosaic_0001>

<bundles_post_ra>
// kernel: tpu_custom_call.1
= control target key start
LH: loop header
LB: loop body
LE: loop exit
PB: predicated region body
PF: predicated region fallthrough
CT: control target
= control target key end

     0   :  { %10 = vsyncpa [#allocation3], 0  ;;  %s1206_s0 = inlined_call_operand.vmem [shape: f32[4,3,128], index: 0, kind: input, shape index: {}]   ;;  %s1207_s1 = inlined_call_operand.vmem [shape: f32[4,3,128], index: 1, kind: input, shape index: {}]   ;;  %s1208_s2 = inlined_call_operand.vmem [shape: f32[4,1,128], index: 2, kind: input, shape index: {}]   ;;  %s1209_s3 = inlined_call_operand.vmem [shape: f32[4,9,128], index: 3, kind: output, shape index: {0}]   ;;  %s1210_s4 = inlined_call_operand.hbm [shape: f32[4,1,8], index: 4, kind: output, shape index: {1}]  }
   0x1   :  { %12 = vsyncpa [#allocation3 + $0x1], 0  ;;  %s874_s15 = smov 0   ;;  %s876_s16 = smov 0  }
   0x2   :  { %s878_s17 = smov 0   ;;  %s880_s18 = smov 0  }
   0x3 LB: > { %s895_s19 = sadd.s32 4294967295, %s843_s18   ;;  %s698_s20 = sadd.s32 4294967294, %s843_s18   ;;  %s843_s18 = sphi %s880_s18, %s1216_s18   ;;  %s839_s17 = sphi %s878_s17, %s1215_s17   ;;  %s835_s16 = sphi %s876_s16, %s1214_s16   ;;  %s831_s15 = sphi %s874_s15, %s1213_s15  }
   0x4   : > { %s899_s21 = sadd.s32 1, %s843_s18   ;;  %s129_s22 = sadd.s32 1, %s839_s17 }
   0x5   : > { %s126_s23 = ssub.s32 %s843_s18, %s899_s21  ;;  %p139_p0 = scmp.ne.s32.totalorder %s839_s17, %s835_s16 }
   0x6   : > { %p127_p1 = scmp.eq.s32.totalorder %s126_s23, 0  ;;  %p140_p2 = scmp.eq.s32.totalorder %s895_s19, 1 }
   0x7   : > { %p145_p3 = scmp.ne.s32.totalorder %s835_s16, %s831_s15  ;;  %p146_p4 = scmp.eq.s32.totalorder %s698_s20, 1 }
   0x8   : > { %s910_s24 = scalar_select %p127_p1, %s839_s17, %s129_s22  }
   0x9   : > { %p912_p5 = por %p140_p2, %p139_p0  ;;  %p916_p6 = por %p146_p4, %p145_p3 }
   0xa   : > { %p701_p7 = scmp.ge.s32.totalorder %s843_s18, 1  ;;  %p190_p8 = scmp.lt.s32.totalorder %s843_s18, 3 }
   0xc   : > { %p191_p9 = pnand %p701_p7, %p190_p8 }
   0xd   : > { %s703_s27 = sshll.u32 (!%p191_p9), %s895_s19, 1  ;;  %v262_v0 = vlaneseq (!%p191_p9)  ;;  %v845_v2 = vmov (!%p191_p9), 0.0   ;;  %vm278_vm1 = vcmask (!%p191_p9), 1041409   ;;  %vm269_vm2 = vcmask (!%p191_p9), 1040384   ;;  %s228_s9 = sand.u32 (!%p191_p9), 1, %s835_s16  }
   0xe   : > { %194 = sbr.rel (%p191_p9) target bundleno = 415 (0x19f), region = 32  ;;  %p232_p10 = scmp.lt.s32.totalorder (!%p191_p9), %s703_s27, 3  ;;  %vm541_vm3 = vcmask (!%p191_p9), 0   ;;  %vm544_vm4 = vcmask (!%p191_p9), 9225   ;;  %vm547_vm13 = vcmask (!%p191_p9), 16400   ;;  %vm550_vm14 = vcmask (!%p191_p9), 24600  }
   0xf   : > { %v263_v1 = vand.u32 (!%p191_p9), 127, %v262_v0  ;;  %s702_s10 = sshll.u32 (!%p191_p9), %s228_s9, 1  ;;  %vm553_vm15 = vcmask (!%p191_p9), 33825   ;;  %s718_s12 = sshll.u32 (!%p191_p9), %s895_s19, 5 }
  0x10   : > { %s983_s11 = scalar_lea.vmem (!%p191_p9), [#allocation2], %s702_s10  ;;  %s1102_s20 = scalar_lea.hbm (!%p191_p9), %s1210_s4, %s718_s12 }
  0x11   : > { %vm264_vm0 = vcmp.lt.s32.totalorder (!%p191_p9), %v263_v1, 120  ;;  %s589_s13 = sshll.u32 (!%p191_p9), %s983_s11, 4  ;;  %s1116_s22 = scalar_lea.sflag (!%p191_p9), [#allocation3], %s228_s9  ;;  %s1104_s13 = int_to_ptr.vmem [resolvable:$true] %s589_s13 }
  0x12   : > { %v928_v3 = vsel (!%p191_p9), %vm264_vm0, 1.0, %v845_v2  ;;  %vm556_vm0 = vcmask (!%p191_p9), 41000   ;;  %s781_s23 = scalar_lea.vmem (!%p191_p9), %s1104_s13, 32 }
  0x13   : > { %p782_p11 = scmp.ne.s32.totalorder (!%p191_p9), %s1104_s13, %s781_s23 }
  0x15   : > { %s1218_s27 = smov (!%p232_p10, %s703_s27), 3  ;;  %p783_p12 = pnand %p782_p11, %p912_p5 }
  0x16   : > { %s704_s28 = sshll.u32 %s1218_s27, 2 }
  0x17   : > { %s235_s5 = scalar_lea.vmem %s1206_s0, %s704_s28  ;;  %s241_s8 = scalar_lea.vmem %s1207_s1, %s704_s28 }
  0x18   : > { %v933_v4 = vld [vmem:[%s235_s5 + $0x4] sm:$0x7]  ;;  %v935_v5 = vld [vmem:[%s235_s5] sm:$0x7]  ;;  %p784_p13 = pneg %p783_p12  ;;  %s846_s28 = smov [#allocation2]  }
  0x19   : > { %v268_v6 = vmul.f32 %v928_v3, %v933_v4  ;;  %v267_v7 = vmul.f32 %v928_v3, %v935_v5  ;;  %v944_v8 = vld [vmem:[%s241_s8 + $0x4] sm:$0x7]  ;;  %v946_v9 = vld [vmem:[%s241_s8] sm:$0x7]  ;;  %s785_s29 = sshll.u32 %s846_s28, 4  ;;  %s786_s29 = int_to_ptr.vmem [resolvable:$false] %s785_s29 }
  0x1a   : > { %v288_v10 = vmul.f32 %v928_v3, %v944_v8  ;;  %v287_v11 = vmul.f32 %v928_v3, %v946_v9  ;;  %s787_s30 = scalar_lea.vmem %s786_s29, 64  ;;  %p788_p0 = scmp.lt.s32.totalorder %s1104_s13, %s786_s29 }
  0x1b   : > { %v282_v12 = vsel %vm278_vm1, %v268_v6, 0.0  ;;  %v279_v13 = vsel %vm278_vm1, %v267_v7, 0.0  ;;  %v270_v17 = vsel %vm269_vm2, %v267_v7, 0.0  ;;  %v273_v19 = vsel %vm269_vm2, %v268_v6, 0.0  ;;  %p789_p1 = scmp.lt.s32.totalorder %s787_s30, %s781_s23 }
  0x1c   : > { %283 = vadd.xlane.f32.xlu1 %v282_v12  ;;  %280 = vadd.xlane.f32.xlu0 %v279_v13  ;;  %v300_v14 = vsel %vm278_vm1, %v288_v10, 0.0  ;;  %v297_v15 = vsel %vm278_vm1, %v287_v11, 0.0  ;;  %v289_v16 = vsel %vm269_vm2, %v287_v11, 0.0  ;;  %v292_v18 = vsel %vm269_vm2, %v288_v10, 0.0 }
  0x1d   : > { %vm559_vm1 = vcmask 49200   ;;  %p790_p2 = por %p789_p1, %p788_p0 }
  0x1f   : > { %p791_p3 = pnand %p790_p2, %p784_p13 }
  0x20   : > { %301 = vadd.xlane.f32.xlu1 %v300_v14  ;;  %298 = vadd.xlane.f32.xlu0 %v297_v15 }
  0x24   : > { %290 = vadd.xlane.f32.xlu1 %v289_v16  ;;  %271 = vadd.xlane.f32.xlu0 %v270_v17 }
  0x28   : > { %293 = vadd.xlane.f32.xlu1 %v292_v18  ;;  %274 = vadd.xlane.f32.xlu0 %v273_v19 }
  0xa9   : > { %v284_v20 = vpop.xlane.xlu1 %283  ;;  %v281_v21 = vpop.xlane.xlu0 %280 }
  0xaa   : > { %v956_v22 = vmul.f32 0.008333334, %v281_v21  ;;  %v963_v26 = vmul.f32 0.008333334, %v284_v20 }
  0xac   : > { %v307_v25 = vsub.f32 %v935_v5, %v956_v22  ;;  %v308_v35 = vsub.f32 %v933_v4, %v963_v26 }
  0xad   : > { %v302_v23 = vpop.xlane.xlu1 %301  ;;  %v299_v24 = vpop.xlane.xlu0 %298 }
  0xae   : > { %v965_v27 = vmul.f32 0.008333334, %v302_v23  ;;  %v967_v28 = vmul.f32 0.008333334, %v299_v24  ;;  %v315_v32 = vmul.f32 %v307_v25, %v307_v25  ;;  %v316_v46 = vmul.f32 %v308_v35, %v308_v35 }
  0xb0   : > { %v311_v29 = vsub.f32 %v946_v9, %v967_v28  ;;  %v312_v36 = vsub.f32 %v944_v8, %v965_v27  ;;  %v319_v42 = vrot.slane %v315_v32, 1  ;;  %v320_v54 = vrot.slane %v316_v46, 1 }
  0xb1   : > { %v291_v30 = vpop.xlane.xlu1 %290  ;;  %v272_v31 = vpop.xlane.xlu0 %271 }
  0xb2   : > { %v971_v33 = vmul.f32 0.008333334, %v291_v30  ;;  %v973_v34 = vmul.f32 0.008333334, %v272_v31  ;;  %v351_v37 = vmul.f32 %v311_v29, %v311_v29  ;;  %v352_v47 = vmul.f32 %v312_v36, %v312_v36 }
  0xb4   : > { %v309_v38 = vsub.f32 %v946_v9, %v971_v33  ;;  %v305_v39 = vsub.f32 %v935_v5, %v973_v34  ;;  %542 = vst.msk [vmem:[%s983_s11] sm:$0x1] %vm541_vm3, %v973_v34  ;;  %v355_v43 = vrot.slane %v351_v37, 1  ;;  %v356_v55 = vrot.slane %v352_v47, 1 }
  0xb5   : > { %545 = vst.msk [vmem:[%s983_s11 - $0x1] sm:$0x2] %vm544_vm4, %v956_v22  ;;  %v294_v40 = vpop.xlane.xlu1 %293  ;;  %v275_v41 = vpop.xlane.xlu0 %274 }
  0xb6   : > { %v349_v44 = vmul.f32 %v309_v38, %v309_v38  ;;  %v313_v45 = vmul.f32 %v305_v39, %v305_v39  ;;  %v991_v48 = vmul.f32 0.008333334, %v294_v40  ;;  %v993_v49 = vmul.f32 0.008333334, %v275_v41 }
  0xb7   : > { %v410_v40 = vrot.slane %v933_v4, 1 }
  0xb8   : > { %v359_v50 = vadd.f32 %v355_v43, %v349_v44  ;;  %v323_v51 = vadd.f32 %v319_v42, %v313_v45  ;;  %v310_v52 = vsub.f32 %v944_v8, %v991_v48  ;;  %v306_v53 = vsub.f32 %v933_v4, %v993_v49  ;;  %543 = vst.msk [vmem:[%s983_s11 + $0x1] sm:$0x1] %vm541_vm3, %v993_v49 }
  0xb9   : > { %546 = vst.msk [vmem:[%s983_s11] sm:$0x2] %vm544_vm4, %v963_v26  ;;  %v409_v43 = vrot.slane %v935_v5, 1  ;;  %v437_v44 = vrot.slane %v946_v9, 1  ;;  %v438_v45 = vrot.slane %v944_v8, 1 }
  0xba   : > { %761 = vrsqrt.f32 %v359_v50  ;;  %v350_v56 = vmul.f32 %v310_v52, %v310_v52  ;;  %v314_v57 = vmul.f32 %v306_v53, %v306_v53  ;;  %vm363_vm5 = vcmp.eq.f32.partialorder %v359_v50, inf }
  0xbb   : > { %763 = vrsqrt.f32 %v323_v51  ;;  %v366_v63 = vand.u32 2147483648, %v359_v50  ;;  %vm365_vm6 = vcmp.eq.f32.partialorder %v359_v50, 0.0  ;;  %vm327_vm7 = vcmp.eq.f32.partialorder %v323_v51, inf }
  0xbc   : > { %v360_v58 = vadd.f32 %v356_v55, %v350_v56  ;;  %v324_v59 = vadd.f32 %v320_v54, %v314_v57  ;;  %v330_v10 = vand.u32 2147483648, %v323_v51  ;;  %vm329_vm8 = vcmp.eq.f32.partialorder %v323_v51, 0.0 }
  0xbd   : > { %v414_v52 = vmul.f32 %v410_v40, %v963_v26  ;;  %v413_v54 = vmul.f32 %v409_v43, %v956_v22  ;;  %v441_v55 = vmul.f32 %v437_v44, %v967_v28  ;;  %v427_v56 = vrot.slane %v946_v9, 2 }
  0xbe   : > { %765 = vrsqrt.f32 %v360_v58  ;;  %vm370_vm9 = vcmp.eq.f32.partialorder %v360_v58, inf  ;;  %v373_v19 = vand.u32 2147483648, %v360_v58  ;;  %vm372_vm10 = vcmp.eq.f32.partialorder %v360_v58, 0.0 }
  0xbf   : > { %767 = vrsqrt.f32 %v324_v59  ;;  %vm334_vm11 = vcmp.eq.f32.partialorder %v324_v59, inf  ;;  %v337_v23 = vand.u32 2147483648, %v324_v59  ;;  %vm336_vm12 = vcmp.eq.f32.partialorder %v324_v59, 0.0 }
  0xc0   : > { %v400_v26 = vrot.slane %v933_v4, 2  ;;  %v415_v22 = vsub.f32 %v935_v5, %v413_v54 }
  0xc4   : > { %v762_v60 = vpop.eup %761 }
  0xc5   : > { %v362_v61 = vmul.f32 %v762_v60, %v359_v50  ;;  %v764_v62 = vpop.eup %763  ;;  %v428_v60 = vrot.slane %v944_v8, 2 }
  0xc6   : > { %v326_v6 = vmul.f32 %v764_v62, %v323_v51  ;;  %v416_v62 = vsub.f32 %v933_v4, %v414_v52 }
  0xc7   : > { %v364_v1 = vsel %vm363_vm5, %v359_v50, %v362_v61 }
  0xc8   : > { %v367_v7 = vsel %vm365_vm6, %v366_v63, %v364_v1  ;;  %v766_v11 = vpop.eup %765  ;;  %v328_v13 = vsel %vm327_vm7, %v323_v51, %v326_v6  ;;  %v443_v63 = vsub.f32 %v946_v9, %v441_v55  ;;  %v431_v1 = vmul.f32 %v427_v56, %v971_v33 }
  0xc9   : > { %v375_v12 = vmul.f32 %v928_v3, %v367_v7  ;;  %v768_v14 = vpop.eup %767  ;;  %v331_v15 = vsel %vm329_vm8, %v330_v10, %v328_v13  ;;  %v369_v16 = vmul.f32 %v766_v11, %v360_v58  ;;  %v432_v10 = vmul.f32 %v428_v60, %v991_v48 }
  0xca   : > { %v339_v18 = vmul.f32 %v928_v3, %v331_v15  ;;  %v333_v20 = vmul.f32 %v768_v14, %v324_v59  ;;  %v404_v13 = vmul.f32 %v400_v26, %v993_v49  ;;  %v469_v14 = vmul.f32 %v935_v5, %v935_v5 }
  0xcb   : > { %v377_v17 = vsel %vm269_vm2, %v375_v12, 0.0  ;;  %v371_v21 = vsel %vm370_vm9, %v360_v58, %v369_v16  ;;  %v442_v58 = vmul.f32 %v438_v45, %v965_v27  ;;  %v420_v12 = vrot.slane %v416_v62, 1 }
  0xcc   : > { %378 = vadd.xlane.f32.xlu1 %v377_v17  ;;  %v341_v24 = vsel %vm269_vm2, %v339_v18, 0.0  ;;  %v374_v25 = vsel %vm372_vm10, %v373_v19, %v371_v21  ;;  %v335_v29 = vsel %vm334_vm11, %v324_v59, %v333_v20  ;;  %v399_v59 = vrot.slane %v935_v5, 2 }
  0xcd   : > { %342 = vadd.xlane.f32.xlu0 %v341_v24  ;;  %v376_v30 = vmul.f32 %v928_v3, %v374_v25  ;;  %v338_v31 = vsel %vm336_vm12, %v337_v23, %v335_v29  ;;  %v444_v6 = vsub.f32 %v944_v8, %v442_v58  ;;  %v419_v15 = vrot.slane %v415_v22, 1 }
  0xce   : > { %v340_v32 = vmul.f32 %v928_v3, %v338_v31  ;;  %v403_v7 = vmul.f32 %v399_v59, %v973_v34  ;;  %v447_v16 = vrot.slane %v443_v63, 1  ;;  %v433_v17 = vsub.f32 %v946_v9, %v431_v1 }
  0xcf   : > { %v380_v35 = vsel %vm269_vm2, %v376_v30, 0.0  ;;  %v448_v20 = vrot.slane %v444_v6, 1  ;;  %v434_v34 = vsub.f32 %v944_v8, %v432_v10  ;;  %v406_v25 = vsub.f32 %v933_v4, %v404_v13 }
  0xd0   : > { %381 = vadd.xlane.f32.xlu1 %v380_v35  ;;  %v344_v36 = vsel %vm269_vm2, %v340_v32, 0.0  ;;  %v405_v21 = vsub.f32 %v935_v5, %v403_v7  ;;  %v473_v29 = vrot.slane %v469_v14, 2  ;;  %vm562_vm2 = vcmask 57400  }
  0xd1   : > { %345 = vadd.xlane.f32.xlu0 %v344_v36 }
 0x159   : > { %v379_v37 = vpop.xlane.xlu1 %378 }
 0x15a   : > { %v383_v38 = vmul.f32 0.008333334, %v379_v37  ;;  %v343_v39 = vpop.xlane.xlu0 %342  ;;  %v470_v37 = vmul.f32 %v933_v4, %v933_v4 }
 0x15b   : > { %v347_v42 = vmul.f32 0.008333334, %v343_v39 }
 0x15c   : > { %v391_v41 = vmax.f32 %v383_v38, 1e-20 }
 0x15d   : > { %v385_v46 = vmax.f32 %v347_v42, 1e-20  ;;  %v382_v47 = vpop.xlane.xlu1 %381 }
 0x15e   : > { %769 = vrcp.f32 %v391_v41  ;;  %v384_v50 = vmul.f32 0.008333334, %v382_v47  ;;  %v346_v51 = vpop.xlane.xlu0 %345 }
 0x15f   : > { %771 = vrcp.f32 %v385_v46  ;;  %v348_v53 = vmul.f32 0.008333334, %v346_v51  ;;  %v474_v51 = vrot.slane %v470_v37, 2 }
 0x160   : > { %v392_v57 = vmax.f32 %v384_v50, 1e-20 }
 0x161   : > { %v386_v61 = vmax.f32 %v348_v53, 1e-20 }
 0x162   : > { %773 = vrcp.f32 %v392_v57 }
 0x163   : > { %775 = vrcp.f32 %v386_v61 }
 0x168   : > { %v770_v11 = vpop.eup %769 }
 0x169   : > { %v394_v18 = vmul.f32 1.4142, %v770_v11  ;;  %v772_v19 = vpop.eup %771 }
 0x16a   : > { %v388_v24 = vmul.f32 1.4142, %v772_v19 }
 0x16b   : > { %v1038_v23 = vmul.f32 %v433_v17, %v394_v18  ;;  %v1040_v49 = vmul.f32 %v447_v16, %v394_v18 }
 0x16c   : > { %v774_v9 = vpop.eup %773  ;;  %v1047_v31 = vmul.f32 %v405_v21, %v388_v24  ;;  %v1049_v32 = vmul.f32 %v419_v15, %v388_v24  ;;  %548 = vst.msk [vmem:[%s983_s11] sm:$0x1] %vm547_vm13, %v388_v24 }
 0x16d   : > { %v455_v30 = vmul.f32 %v1038_v23, %v1038_v23  ;;  %v457_v8 = vmul.f32 %v1040_v49, %v1040_v49  ;;  %v776_v35 = vpop.eup %775  ;;  %551 = vst.msk [vmem:[%s983_s11] sm:$0x1] %vm550_vm14, %v971_v33  ;;  %v396_v36 = vmul.f32 1.4142, %v774_v9 }
 0x16e   : > { %v463_v39 = vmul.f32 %v1047_v31, %v1047_v31  ;;  %v465_v40 = vmul.f32 %v1049_v32, %v1049_v32  ;;  %554 = vst.msk [vmem:[%s983_s11 - $0x1] sm:$0x2] %vm553_vm15, %v967_v28  ;;  %v390_v33 = vmul.f32 1.4142, %v776_v35 }
 0x16f   : > { %v459_v38 = vadd.f32 %v457_v8, %v455_v30  ;;  %v1065_v41 = vmul.f32 %v434_v34, %v396_v36  ;;  %v1067_v42 = vmul.f32 %v448_v20, %v396_v36  ;;  %557 = vst.msk [vmem:[%s983_s11] sm:$0x1] %vm556_vm0, %v394_v18 }
 0x170   : > { %v467_v44 = vadd.f32 %v465_v40, %v463_v39  ;;  %v1073_v45 = vmul.f32 %v406_v25, %v390_v33  ;;  %v1075_v46 = vmul.f32 %v420_v12, %v390_v33  ;;  %549 = vst.msk [vmem:[%s983_s11 + $0x1] sm:$0x1] %vm547_vm13, %v390_v33 }
 0x171   : > { %v461_v43 = vadd.f32 1.0, %v459_v38  ;;  %560 = vst.msk [vmem:[%s983_s11] sm:$0x1] %vm559_vm1, %v845_v2  ;;  %v456_v28 = vmul.f32 %v1065_v41, %v1065_v41  ;;  %v458_v47 = vmul.f32 %v1067_v42, %v1067_v42 }
 0x172   : > { %552 = vst.msk [vmem:[%s983_s11 + $0x1] sm:$0x1] %vm550_vm14, %v991_v48  ;;  %v477_v50 = vadd.f32 %v473_v29, %v467_v44  ;;  %v464_v52 = vmul.f32 %v1073_v45, %v1073_v45  ;;  %v466_v53 = vmul.f32 %v1075_v46, %v1075_v46 }
 0x173   : > { %563 = vst.msk [vmem:[%s983_s11] sm:$0x1] %vm562_vm2, %v845_v2  ;;  %v460_v48 = vadd.f32 %v458_v47, %v456_v28 }
 0x174   : > { %555 = vst.msk [vmem:[%s983_s11] sm:$0x2] %vm553_vm15, %v965_v27  ;;  %v479_v54 = vmul.f32 %v477_v50, %v461_v43  ;;  %v468_v55 = vadd.f32 %v466_v53, %v464_v52 }
 0x175   : > { %558 = vst.msk [vmem:[%s983_s11 + $0x1] sm:$0x1] %vm556_vm0, %v396_v36  ;;  %v462_v56 = vadd.f32 1.0, %v460_v48 }
 0x176   : > { %561 = vst.msk [vmem:[%s983_s11 + $0x1] sm:$0x1] %vm559_vm1, %v845_v2  ;;  %v481_v27 = vmax.f32 %v479_v54, 1e-24  ;;  %v478_v57 = vadd.f32 %v474_v51, %v468_v55 }
 0x177   : > { %564 = vst.msk [vmem:[%s983_s11 + $0x1] sm:$0x1] %vm562_vm2, %v845_v2 }
 0x178   : > { %794 = shalt.err (!%p791_p3)
}
 0x179   : > { %s795_s5 = scalar_lea.hbm %s1102_s20, 32  ;;  %s799_s8 = scalar_lea.hbm %s1210_s4, 64 }
 0x17a   : > { %p796_p4 = scmp.ne.s32.totalorder %s1102_s20, %s795_s5  ;;  %p800_p9 = scmp.lt.u32.totalorder %s1102_s20, %s1210_s4 }
 0x17b   : > { %p801_p10 = scmp.lt.u32.totalorder %s799_s8, %s795_s5  ;;  %p803_p12 = scmp.lt.u32.totalorder %s795_s5, %s1102_s20 }
 0x17c   : > { %p797_p7 = pnand %p796_p4, %p912_p5 }
 0x17d   : > { %p802_p11 = por %p801_p10, %p800_p9 }
 0x17e   : > { %p798_p8 = pneg %p797_p7 }
 0x17f   : > { %p804_p13 = por %p803_p12, %p802_p11 }
 0x181   : > { %p805_p0 = pnand %p804_p13, %p798_p8 }
 0x183   : > { %808 = shalt.err (!%p805_p0)
}
 0x184   : > { %s847_s11 = smov 16   ;;  %s848_s12 = smov 1   ;;  %777 = vrsqrt.f32 %v481_v27  ;;  %v480_v2 = vmul.f32 %v478_v57, %v462_v56  ;;  %v494_v60 = vshrl.u32 %v262_v0, 7 }
 0x185   : > { %719 = dma.vmem_to_hbm [thread:$0]  (%p912_p5), %s1104_s13, 32, %s1102_s20, %s1116_s22, %s847_s11, %s847_s11, %s848_s12  }
 0x186   : > { %s246_s23 = scalar_lea.vmem %s1208_s2, %s1218_s27  ;;  %v482_v58 = vmax.f32 %v480_v2, 1e-24  ;;  %s717_s28 = sshll.u32 %s1218_s27, 4  ;;  %v495_v62 = vsub.s32 0, %v494_v60 }
 0x187   : > { %v260_v59 = vld [vmem:[%s246_s23] sm:$0x1]  ;;  %v261_v26 = vld [vmem:[%s246_s23 + $0x1] sm:$0x1]  ;;  %s1150_s20 = scalar_lea.vmem %s1209_s3, %s717_s28 }
 0x188   : > { %779 = vrsqrt.f32 %v482_v58  ;;  %v453_v61 = vmul.f32 %v928_v3, %v260_v59  ;;  %v454_v1 = vmul.f32 %v928_v3, %v261_v26 }
 0x18e   : > { %v778_v22 = vpop.eup %777 }
 0x18f   : > { %v485_v63 = vmul.f32 %v778_v22, %v453_v61 }
 0x191   : > { %v487_v0 = vmul.f32 %v485_v63, %v1047_v31  ;;  %v489_v6 = vmul.f32 %v485_v63, %v1049_v32  ;;  %v496_v7 = vrot.slane %v485_v63, %v495_v62 }
 0x192   : > { %v780_v10 = vpop.eup %779 }
 0x193   : > { %v503_v11 = vmul.f32 %v496_v7, %v935_v5  ;;  %v505_v12 = vmul.f32 %v487_v0, %v1038_v23  ;;  %v509_v13 = vmul.f32 %v489_v6, %v1038_v23  ;;  %v523_v14 = vmul.f32 %v487_v0, %v1040_v49  ;;  %535 = vst [vmem:[%s1150_s20 + $0x6] sm:$0x1] %v487_v0 }
 0x194   : > { %537 = vst [vmem:[%s1150_s20 + $0x7] sm:$0x1] %v489_v6  ;;  %v527_v3 = vmul.f32 %v489_v6, %v1040_v49  ;;  %v486_v15 = vmul.f32 %v780_v10, %v454_v1 }
 0x195   : > { %507 = vst [vmem:[%s1150_s20] sm:$0x1] %v505_v12  ;;  %511 = vst [vmem:[%s1150_s20 + $0x1] sm:$0x1] %v509_v13  ;;  %v515_v16 = vrot.slane %v503_v11, 2 }
 0x196   : > { %525 = vst [vmem:[%s1150_s20 + $0x3] sm:$0x1] %v523_v14  ;;  %539 = vst [vmem:[%s1150_s20 + $0x6] sm:$0x4] %v503_v11  ;;  %v488_v5 = vmul.f32 %v486_v15, %v1073_v45  ;;  %v490_v17 = vmul.f32 %v486_v15, %v1075_v46  ;;  %v500_v18 = vrot.slane %v486_v15, %v495_v62 }
 0x197   : > { %529 = vst [vmem:[%s1150_s20 + $0x4] sm:$0x1] %v527_v3  ;;  %v519_v19 = vmul.f32 %v515_v16, %v1038_v23  ;;  %v531_v20 = vmul.f32 %v515_v16, %v1040_v49 }
 0x198   : > { %v504_v21 = vmul.f32 %v500_v18, %v933_v4  ;;  %v506_v34 = vmul.f32 %v488_v5, %v1065_v41  ;;  %v510_v24 = vmul.f32 %v490_v17, %v1065_v41  ;;  %v524_v25 = vmul.f32 %v488_v5, %v1067_v42  ;;  %536 = vst [vmem:[%s1150_s20 + $0x16] sm:$0x1] %v488_v5 }
 0x199   : > { %538 = vst [vmem:[%s1150_s20 + $0x17] sm:$0x1] %v490_v17  ;;  %521 = vst [vmem:[%s1150_s20 + $0x2] sm:$0x1] %v519_v19  ;;  %v528_v29 = vmul.f32 %v490_v17, %v1067_v42 }
 0x19a   : > { %533 = vst [vmem:[%s1150_s20 + $0x5] sm:$0x1] %v531_v20  ;;  %508 = vst [vmem:[%s1150_s20 + $0x10] sm:$0x1] %v506_v34  ;;  %v516_v23 = vrot.slane %v504_v21, 2 }
 0x19b   : > { %512 = vst [vmem:[%s1150_s20 + $0x11] sm:$0x1] %v510_v24  ;;  %526 = vst [vmem:[%s1150_s20 + $0x13] sm:$0x1] %v524_v25 }
 0x19c   : > { %540 = vst [vmem:[%s1150_s20 + $0x16] sm:$0x4] %v504_v21  ;;  %530 = vst [vmem:[%s1150_s20 + $0x14] sm:$0x1] %v528_v29  ;;  %v520_v4 = vmul.f32 %v516_v23, %v1065_v41  ;;  %v532_v49 = vmul.f32 %v516_v23, %v1067_v42 }
 0x19e   : > { %522 = vst [vmem:[%s1150_s20 + $0x12] sm:$0x1] %v520_v4  ;;  %534 = vst [vmem:[%s1150_s20 + $0x15] sm:$0x1] %v532_v49 }
 0x19f PF: > { %p725_p5 = scmp.ge.s32.totalorder %s843_s18, 2  ;;  %s613_s27 = sand.u32 1, %s831_s15  }
 0x1a0   : > { %s614_s22 = scalar_lea.sflag [#allocation3], %s613_s27 }
 0x1a1   : > { %p722_p1 = pnand %p725_p5, %p916_p6 }
 0x1a3   : > { %826 = dma.done.wait (!%p722_p1), %s614_s22, 32  }
 0x1a4   : > { %828 = vsyncadd (!%p722_p1), %s614_s22, 4294967264  ;;  %p15_p2 = scmp.ge.s32.totalorder %s899_s21, 4   ;;  %s1213_s15 = smov %s835_s16 }
 0x1a5   : > { %s1214_s16 = smov %s839_s17  ;;  %s1215_s17 = smov %s910_s24 }
 0x1a6   : > { %s1216_s18 = smov %s899_s21  ;;  %17 = sbr.rel (!%p15_p2) target bundleno = 3 (0x3), region = 85 }
 0x1ad   :  { %619 = vsyncpa [#allocation3], 1 }
 0x1ae   :  { %621 = vsyncpa [#allocation3 + $0x1], 1 }

</bundles_post_ra>
